<compile_context>
chip_gen: v7x
topology: tpu7x:2x2x1
jax: 0.10.0
libtpu: 0.0.40
codegen_flags: <defaults>
</compile_context>

<pallas_src>
import functools

import jax
import jax.numpy as jnp
from jax.experimental import pallas as pl
from jax.experimental.pallas import tpu as pltpu


def _attn_head_kernel(x_ref, wqkv_ref, bqkv_ref, o_ref, *, head_size, seq):
    """x_ref: (Bt*S, W) token block; wqkv_ref: (W, 3H); bqkv_ref: (1, 3H) f32;
    o_ref: (Bt, S, H)."""
    H = head_size
    n_tok = x_ref.shape[0]
    Bt = n_tok // seq
    cdt = x_ref.dtype  # MXU input dtype (f32, or bf16 on v6e/v7x)

    # Fused QKV projection: one MXU matmul, f32 accumulation, f32 bias add.
    qkv = jnp.dot(x_ref[...], wqkv_ref[...],
                  preferred_element_type=jnp.float32) + bqkv_ref[...]
    qkv = qkv.reshape(Bt, seq, 3 * H)          # last dim unchanged -> cheap retile

    q = qkv[:, :, 0:H].astype(cdt)             # 1/sqrt(H) already folded into wq/bq
    k = qkv[:, :, H:2 * H].astype(cdt)
    v = qkv[:, :, 2 * H:3 * H].astype(cdt)

    # scores[b] = q[b] @ k[b]^T as a transposed contraction (no explicit transpose).
    scores = jax.lax.dot_general(
        q, k,
        dimension_numbers=(((2,), (2,)), ((0,), (0,))),
        preferred_element_type=jnp.float32)    # (Bt, S, S)

    # Numerically stable softmax in f32 (matches torch.softmax).
    scores = scores - jnp.max(scores, axis=-1, keepdims=True)
    p = jnp.exp(scores)
    p = p * pl.reciprocal(jnp.sum(p, axis=-1, keepdims=True), approx=True)

    # out[b] = p[b] @ v[b]
    out = jax.lax.dot_general(
        p.astype(cdt), v,
        dimension_numbers=(((2,), (1,)), ((0,), (0,))),
        preferred_element_type=jnp.float32)    # (Bt, S, H)

    o_ref[...] = out.astype(o_ref.dtype)


def attention_head(x, wq, bq, wk, bk, wv, bv, *, compute_dtype=None, batch_tile=None):
    """Single-head attention.

    x: (B, S, W); w*: (W, H); b*: (H,). Returns (B, S, H) in x.dtype.
    compute_dtype: optional MXU input dtype (e.g. jnp.bfloat16 on v6e/v7x);
                   accumulation and softmax math stay f32.
    batch_tile:    batch elements per grid step (default: the whole batch).
    """
    B, S, W = x.shape
    H = wq.shape[1]

    # Fold the 1/sqrt(head_size) scale into the Q projection; fuse Q|K|V params.
    scale = 1.0 / (H ** 0.5)
    wqkv = jnp.concatenate([wq * scale, wk, wv], axis=1)            # (W, 3H)
    bqkv = jnp.concatenate([bq * scale, bk, bv]).reshape(1, 3 * H)  # (1, 3H)
    bqkv = bqkv.astype(jnp.float32)

    x_tok = x.reshape(B * S, W)  # free row-major reshape in the wrapper
    if compute_dtype is not None:
        x_tok = x_tok.astype(compute_dtype)
        wqkv = wqkv.astype(compute_dtype)

    Bt = B if batch_tile is None else min(batch_tile, B)
    assert B % Bt == 0, "batch_tile must divide the batch size"

    kernel = functools.partial(_attn_head_kernel, head_size=H, seq=S)

    return pl.pallas_call(
        kernel,
        out_shape=jax.ShapeDtypeStruct((B, S, H), x.dtype),
        grid=(B // Bt,),
        in_specs=[
            pl.BlockSpec((Bt * S, W), lambda b: (b, 0)),     # token block
            pl.BlockSpec((W, 3 * H), lambda b: (0, 0)),      # fused QKV weight
            pl.BlockSpec((1, 3 * H), lambda b: (0, 0)),      # fused QKV bias
        ],
        out_specs=pl.BlockSpec((Bt, S, H), lambda b: (b, 0, 0)),
        compiler_params=pltpu.CompilerParams(
            dimension_semantics=("parallel",),
            vmem_limit_bytes=32 * 1024 * 1024,
        ),
    )(x_tok, wqkv, bqkv)


def _reference(x, wq, bq, wk, bk, wv, bv):
    H = wq.shape[1]
    q = x @ wq + bq
    k = x @ wk + bk
    v = x @ wv + bv
    att = jnp.einsum("bsh,bth->bst", q, k) / (H ** 0.5)
    att = jax.nn.softmax(att, axis=-1)
    return jnp.einsum("bst,bth->bsh", att, v)


if __name__ == "__main__":
    # Small shapes consistent with the module: batch=2, seq=8, width=32, head_size=16
    B, S, W, H = 2, 8, 32, 16

    key = jax.random.PRNGKey(0)
    kx, kwq, kbq, kwk, kbk, kwv, kbv = jax.random.split(key, 7)

    x = jax.random.normal(kx, (B, S, W), dtype=jnp.float32)
    # Deterministic parameter init (shapes follow nn.Linear(width, head_size)).
    wq = jax.random.normal(kwq, (W, H), dtype=jnp.float32) * 0.1
    bq = jax.random.normal(kbq, (H,), dtype=jnp.float32) * 0.1
    wk = jax.random.normal(kwk, (W, H), dtype=jnp.float32) * 0.1
    bk = jax.random.normal(kbk, (H,), dtype=jnp.float32) * 0.1
    wv = jax.random.normal(kwv, (W, H), dtype=jnp.float32) * 0.1
    bv = jax.random.normal(kbv, (H,), dtype=jnp.float32) * 0.1

    ref = _reference(x, wq, bq, wk, bk, wv, bv)

    # f32 path (v5e-friendly: f32 vector math and f32 MXU inputs).
    out = jax.block_until_ready(attention_head(x, wq, bq, wk, bk, wv, bv))
    assert out.shape == (B, S, H), out.shape
    assert jnp.allclose(out, ref, atol=5e-3, rtol=5e-3), "f32 kernel mismatch vs reference"

    # bf16 MXU path (v6e/v7x): bf16 inputs/weights, f32 accumulation + f32 softmax.
    out_bf16 = jax.block_until_ready(
        attention_head(x, wq, bq, wk, bk, wv, bv, compute_dtype=jnp.bfloat16))
    assert out_bf16.shape == (B, S, H), out_bf16.shape
    assert jnp.allclose(out_bf16, ref, atol=5e-2, rtol=5e-2), "bf16 kernel mismatch vs reference"

    print("KERNEL_OK")
</pallas_src>

<mosaic_0001>
module attributes {stable_mosaic.version = 11 : i64} {
  func.func @_attn_head_kernel(%arg0: i32, %arg1: memref<16x32xf32, #tpu.memory_space<vmem>>, %arg2: memref<32x48xf32, #tpu.memory_space<vmem>>, %arg3: memref<1x48xf32, #tpu.memory_space<vmem>>, %arg4: memref<2x8x16xf32, #tpu.memory_space<vmem>>) attributes {dimension_semantics = [#tpu.dimension_semantics<parallel>], iteration_bounds = array<i64: 1>, scalar_prefetch = 0 : i64, scratch_operands = 0 : i64, tpu.core_type = #tpu.core_type<tc>, window_params = [{transform_indices = @transform_0, window_bounds = array<i64: 16, 32>}, {pipeline_mode = #tpu.pipeline_mode<synchronous>, transform_indices = @transform_1, window_bounds = array<i64: 32, 48>}, {pipeline_mode = #tpu.pipeline_mode<synchronous>, transform_indices = @transform_2, window_bounds = array<i64: 1, 48>}, {transform_indices = @transform_3, window_bounds = array<i64: 2, 8, 16>}]} {
    %c0 = arith.constant 0 : index
    %c0_0 = arith.constant 0 : index
    %0 = vector.load %arg1[%c0, %c0_0] : memref<16x32xf32, #tpu.memory_space<vmem>>, vector<16x32xf32>
    %c0_1 = arith.constant 0 : index
    %c0_2 = arith.constant 0 : index
    %1 = vector.load %arg2[%c0_1, %c0_2] : memref<32x48xf32, #tpu.memory_space<vmem>>, vector<32x48xf32>
    %cst = arith.constant dense<0.000000e+00> : vector<16x48xf32>
    %2 = tpu.matmul %0, %1, %cst {dimension_numbers = #tpu.dot_dimension_numbers<[1], [0], [0], [1], [0, 0, 1, 1], [], []>} : vector<16x32xf32>, vector<32x48xf32>, vector<16x48xf32> -> vector<16x48xf32>
    %c0_3 = arith.constant 0 : index
    %c0_4 = arith.constant 0 : index
    %3 = vector.load %arg3[%c0_3, %c0_4] : memref<1x48xf32, #tpu.memory_space<vmem>>, vector<1x48xf32>
    %4 = vector.broadcast %3 : vector<1x48xf32> to vector<16x48xf32>
    %5 = arith.addf %2, %4 : vector<16x48xf32>
    %6 = vector.shape_cast %5 : vector<16x48xf32> to vector<2x8x48xf32>
    %7 = vector.extract_strided_slice %6 {offsets = [0, 0, 0], sizes = [2, 8, 16], strides = [1, 1, 1]} : vector<2x8x48xf32> to vector<2x8x16xf32>
    %8 = vector.extract_strided_slice %6 {offsets = [0, 0, 16], sizes = [2, 8, 16], strides = [1, 1, 1]} : vector<2x8x48xf32> to vector<2x8x16xf32>
    %9 = vector.extract_strided_slice %6 {offsets = [0, 0, 32], sizes = [2, 8, 16], strides = [1, 1, 1]} : vector<2x8x48xf32> to vector<2x8x16xf32>
    %cst_5 = arith.constant dense<0.000000e+00> : vector<2x8x8xf32>
    %10 = tpu.matmul %7, %8, %cst_5 {dimension_numbers = #tpu.dot_dimension_numbers<[2], [2], [1], [1], [0, 0, 0, 1, 1, 1], [0], [0]>} : vector<2x8x16xf32>, vector<2x8x16xf32>, vector<2x8x8xf32> -> vector<2x8x8xf32>
    %cst_6 = arith.constant dense<0xFF800000> : vector<2x8xf32>
    %11 = vector.multi_reduction <maximumf>, %10, %cst_6 [2] : vector<2x8x8xf32> to vector<2x8xf32>
    %12 = vector.shape_cast %11 : vector<2x8xf32> to vector<2x8x1xf32>
    %13 = vector.broadcast %12 : vector<2x8x1xf32> to vector<2x8x8xf32>
    %14 = arith.subf %10, %13 : vector<2x8x8xf32>
    %15 = math.exp %14 : vector<2x8x8xf32>
    %cst_7 = arith.constant dense<0.000000e+00> : vector<2x8xf32>
    %16 = vector.multi_reduction <add>, %15, %cst_7 [2] : vector<2x8x8xf32> to vector<2x8xf32>
    %17 = vector.shape_cast %16 : vector<2x8xf32> to vector<2x8x1xf32>
    %18 = tpu.reciprocal %17 {approx = true} : vector<2x8x1xf32> -> vector<2x8x1xf32>
    %19 = vector.broadcast %18 : vector<2x8x1xf32> to vector<2x8x8xf32>
    %20 = arith.mulf %15, %19 : vector<2x8x8xf32>
    %cst_8 = arith.constant dense<0.000000e+00> : vector<2x8x16xf32>
    %21 = tpu.matmul %20, %9, %cst_8 {dimension_numbers = #tpu.dot_dimension_numbers<[2], [1], [1], [2], [0, 0, 0, 1, 1, 2], [0], [0]>} : vector<2x8x8xf32>, vector<2x8x16xf32>, vector<2x8x16xf32> -> vector<2x8x16xf32>
    %c0_9 = arith.constant 0 : index
    %c0_10 = arith.constant 0 : index
    %c0_11 = arith.constant 0 : index
    %22 = vector.load %arg4[%c0_9, %c0_10, %c0_11] : memref<2x8x16xf32, #tpu.memory_space<vmem>>, vector<2x8x16xf32>
    tpu.vector_store %arg4[%c0_9, %c0_10, %c0_11], %21 {strides = array<i32>} : memref<2x8x16xf32, #tpu.memory_space<vmem>>, vector<2x8x16xf32>,
    return
  }
  func.func @transform_0(%arg0: i32) -> (i32, i32) {
    %c0_i32 = arith.constant 0 : i32
    %c0_i32_0 = arith.constant 0 : i32
    return %arg0, %c0_i32 : i32, i32
  }
  func.func @transform_1(%arg0: i32) -> (i32, i32) {
    %c0_i32 = arith.constant 0 : i32
    %c0_i32_0 = arith.constant 0 : i32
    %c0_i32_1 = arith.constant 0 : i32
    return %c0_i32, %c0_i32_0 : i32, i32
  }
  func.func @transform_2(%arg0: i32) -> (i32, i32) {
    %c0_i32 = arith.constant 0 : i32
    %c0_i32_0 = arith.constant 0 : i32
    %c0_i32_1 = arith.constant 0 : i32
    return %c0_i32, %c0_i32_0 : i32, i32
  }
  func.func @transform_3(%arg0: i32) -> (i32, i32, i32) {
    %c0_i32 = arith.constant 0 : i32
    %c0_i32_0 = arith.constant 0 : i32
    %c0_i32_1 = arith.constant 0 : i32
    return %arg0, %c0_i32, %c0_i32_0 : i32, i32, i32
  }
}

</mosaic_0001>

<bundles_post_ra>
// kernel: tpu_custom_call.1
= control target key start
LH: loop header
LB: loop body
LE: loop exit
PB: predicated region body
PF: predicated region fallthrough
CT: control target
= control target key end

     0   :  { %8 = vsyncpa [#allocation3], 0  ;;  %s732_s0 = inlined_call_operand.hbm [shape: f32[16,32], index: 0, kind: input, shape index: {}]   ;;  %s733_s1 = inlined_call_operand.hbm [shape: f32[32,48], index: 1, kind: input, shape index: {}]   ;;  %s734_s2 = inlined_call_operand.vmem [shape: f32[1,48], index: 2, kind: input, shape index: {}]   ;;  %s735_s3 = inlined_call_operand.hbm [shape: f32[2,8,16], index: 3, kind: output, shape index: {}]  }
   0x1   :  { %9 = vsyncpa [#allocation6], 0 }
   0x2   :  { %10 = vsyncpa [#allocation4], 0  ;;  %s639_s12 = smov [#allocation2]   ;;  %s567_s16 = scalar_lea.hbm %s732_s0, 256 }
   0x3   :  { %s16_s13 = sshll.u32 %s639_s12, 4  ;;  %p568_p0 = scmp.ne.s32.totalorder %s732_s0, %s567_s16  ;;  %s17_s13 = int_to_ptr.vmem [resolvable:$true] %s16_s13 }
   0x4   :  { %p571_p1 = scmp.lt.u32.totalorder %s567_s16, %s732_s0 }
   0x6   :  { %p573_p2 = pnand %p571_p1, %p568_p0 }
   0x8   :  { %576 = shalt.err (!%p573_p2)
}
   0x9   :  { %s577_s21 = scalar_lea.vmem %s17_s13, 256  ;;  %p582_p4 = scmp.lt.s32.totalorder %s17_s13, %s17_s13 }
   0xa   :  { %p578_p3 = scmp.ne.s32.totalorder %s17_s13, %s577_s21  ;;  %p583_p5 = scmp.lt.s32.totalorder %s577_s21, %s577_s21 }
   0xc   :  { %p584_p6 = por %p583_p5, %p582_p4 }
   0xe   :  { %p585_p7 = pnand %p584_p6, %p578_p3 }
  0x10   :  { %588 = shalt.err (!%p585_p7)
}
  0x11   :  { %s640_s22 = smov 128   ;;  %s641_s23 = smov 8  }
  0x12   :  { %22 = dma.hbm_to_vmem [thread:$0]  %s732_s0, 256, %s17_s13, [#allocation3], %s640_s22, %s640_s22, %s641_s23  }
  0x13   :  { %s642_s26 = smov [#allocation5]   ;;  %s589_s30 = scalar_lea.hbm %s733_s1, 512 }
  0x14   :  { %s28_s27 = sshll.u32 %s642_s26, 4  ;;  %p590_p8 = scmp.ne.s32.totalorder %s733_s1, %s589_s30  ;;  %s29_s27 = int_to_ptr.vmem [resolvable:$true] %s28_s27 }
  0x15   :  { %p593_p9 = scmp.lt.u32.totalorder %s589_s30, %s733_s1 }
  0x17   :  { %p595_p10 = pnand %p593_p9, %p590_p8 }
  0x19   :  { %598 = shalt.err (!%p595_p10)
}
  0x1a   :  { %s599_s8 = scalar_lea.vmem %s29_s27, 512  ;;  %p604_p12 = scmp.lt.s32.totalorder %s29_s27, %s29_s27 }
  0x1b   :  { %p600_p11 = scmp.ne.s32.totalorder %s29_s27, %s599_s8  ;;  %p605_p13 = scmp.lt.s32.totalorder %s599_s8, %s599_s8 }
  0x1d   :  { %p606_p0 = por %p605_p13, %p604_p12 }
  0x1f   :  { %p607_p1 = pnand %p606_p0, %p600_p11 }
  0x21   :  { %610 = shalt.err (!%p607_p1)
}
  0x22   :  { %34 = dma.hbm_to_vmem [thread:$0]  %s733_s1, 512, %s29_s27, [#allocation6], %s640_s22, %s640_s22, %s641_s23  }
  0x23   :  { %633 = dma.done.wait [#allocation3], 256  }
  0x24   :  { %634 = vsyncadd [#allocation3], 4294967040 }
  0x25   :  { %635 = dma.done.wait [#allocation6], 512  }
  0x26   :  { %636 = vsyncadd [#allocation6], 4294966784  ;;  %vm56_vm0 = vcmask 261120   ;;  %v45_v0 = vld [vmem:[#allocation5] sm:$0xff]  ;;  %v46_v1 = vld [vmem:[#allocation5 + $0x8] sm:$0xff]  ;;  %v643_v8 = vmov 0.0  }
  0x27   :  { %v47_v2 = vld [vmem:[#allocation5 + $0x10] sm:$0xff]  ;;  %v542_v3 = vpack.c.bf16 %v46_v1, %v45_v0  ;;  %v48_v4 = vld [vmem:[#allocation5 + $0x18] sm:$0xff]  ;;  %522 = vmatprep.subr.mxu1 %v643_v8  ;;  %vm644_vm1 = vmmov 0   ;;  %s645_s11 = smov 112   ;;  %vm141_vm2 = vcmask 130048   ;;  %vm293_vm3 = vcmask 64512  }
  0x28   :  { %v43_v5 = vld [vmem:[#allocation2] sm:$0xff]  ;;  %v546_v6 = vpack.c.bf16 %v48_v4, %v47_v2  ;;  %v44_v7 = vld [vmem:[#allocation2 + $0x8] sm:$0xff]  ;;  %524 = vmatprep.mubr.msk.f32.mxu1 %vm644_vm1, %v643_v8  ;;  %s647_s12 = smov [#allocation7]  }
  0x29   :  { %519 = vmatprep.mubr.msk.f32.mxu0 %vm56_vm0, %v43_v5  ;;  %543 = vmatprep.subr.bf16.mxu0 %v542_v3  ;;  %v488_v9 = vld [vmem:[%s734_s2] ss:$0 sm:$0xff]  ;;  %s646_s2 = smov 96   ;;  %s475_s13 = sshll.u32 %s647_s12, 4  ;;  %s476_s13 = int_to_ptr.vmem [resolvable:$true] %s475_s13 }
  0x2a   :  { %545 = vmatpush3.bf16.msra.mxu0 %v542_v3  ;;  %s611_s14 = scalar_lea.vmem %s476_s13, 256  ;;  %p616_p3 = scmp.lt.s32.totalorder %s476_s13, %s476_s13 }
  0x2b   :  { %547 = vmatprep.subr.bf16.mxu0 %v546_v6  ;;  %p612_p2 = scmp.ne.s32.totalorder %s476_s13, %s611_s14  ;;  %p617_p4 = scmp.lt.s32.totalorder %s611_s14, %s611_s14 }
  0x2d   :  { %p618_p5 = por %p617_p4, %p616_p3 }
  0x2e   :  { %549 = vmatpush3.bf16.msra.mxu0 %v546_v6 }
  0x2f   :  { %532 = vmatprep.subr.mxu0 %v643_v8  ;;  %p619_p6 = pnand %p618_p5, %p612_p2 }
  0x31   :  { %520 = vmatmul.mubr.msk.f32.vlgmr.msra.gmra.mrb[0].mxu0 %vm56_vm0, %v44_v7 }
  0x32   :  { %534 = vmatprep.mubr.msk.f32.mxu0 %vm644_vm1, %v643_v8 }
 0x104   :  { %v521_v10 = vpop.f32.mrb[0].mxu0 }
 0x105   :  { %v129_v11 = vpop.f32.mrb[1].mxu0  ;;  %v135_v13 = vadd.f32 %v521_v10, %v488_v9 }
 0x106   :  { %v130_v12 = vadd.f32 %v488_v9, %v129_v11 }
 0x108   :  { %139 = vrot.lane.b32.xlu0 %v130_v12, %s645_s11 }
 0x10c   :  { %217 = vrot.lane.b32.xlu0 %v135_v13, %s645_s11 }
 0x17a   :  { %v140_v14 = vpop.permute.xlu0 %139 }
 0x17b   :  { %523 = vmatpush3.xpose.msk.msra.mxu1 %vm141_vm2, %v140_v14 }
 0x17c   :  { %527 = vmatprep.subr.mxu1 %v643_v8 }
 0x17e   :  { %525 = vmatmul.mubr.msk.f32.vlgmr.msra.gmra.mrb[0].mxu1 %vm141_vm2, %v130_v12  ;;  %v218_v15 = vpop.permute.xlu0 %217 }
 0x17f   :  { %528 = vmatpush3.xpose.msk.msra.mxu1 %vm141_vm2, %v218_v15  ;;  %529 = vmatprep.mubr.msk.f32.mxu1 %vm644_vm1, %v643_v8 }
 0x180   :  { %537 = vmatprep.subr.mxu1 %v643_v8 }
 0x182   :  { %530 = vmatmul.mubr.msk.f32.vlgmr.msra.gmra.mrb[2].mxu1 %vm141_vm2, %v135_v13 }
 0x183   :  { %539 = vmatprep.mubr.msk.f32.mxu1 %vm644_vm1, %v643_v8 }
 0x251   :  { %v212_v16 = vpop.f32.mrb[0].mxu1 }
 0x252   :  { %v526_v17 = vpop.f32.mrb[1].mxu1  ;;  %v294_v18 = vsel %vm293_vm3, %v212_v16, -inf }
 0x253   :  { %295 = vmax.xlane.f32.xlu1 %v294_v18 }
 0x255   :  { %v289_v19 = vpop.f32.mrb[2].mxu1 }
 0x256   :  { %v531_v20 = vpop.f32.mrb[3].mxu1  ;;  %v297_v21 = vsel %vm293_vm3, %v289_v19, -inf }
 0x257   :  { %298 = vmax.xlane.f32.xlu1 %v297_v21 }
 0x268   :  { %316 = vrot.lane.b32.xlu1 %v130_v12, %s646_s2 }
 0x2e0   :  { %v296_v22 = vpop.xlane.xlu1 %295 }
 0x2e1   :  { %v300_v23 = vsub.f32 %v212_v16, %v296_v22 }
 0x2e3   :  { %v302_v24 = vmul.f32 1.442695, %v300_v23 }
 0x2e4   :  { %v299_v25 = vpop.xlane.xlu1 %298 }
 0x2e5   :  { %559 = vpow2.f32 %v302_v24  ;;  %v301_v26 = vsub.f32 %v289_v19, %v299_v25 }
 0x2e7   :  { %v304_v27 = vmul.f32 1.442695, %v301_v26 }
 0x2e8   :  { %v317_v28 = vpop.permute.xlu1 %316 }
 0x2e9   :  { %561 = vpow2.f32 %v304_v27  ;;  %533 = vmatpush3.msra.mxu0 %v317_v28 }
 0x2ef   :  { %v560_v29 = vpop.eup %559 }
 0x2f0   :  { %v306_v30 = vsel %vm293_vm3, %v560_v29, 0.0 }
 0x2f1   :  { %307 = vadd.xlane.f32.xlu0 %v306_v30 }
 0x2f3   :  { %v562_v31 = vpop.eup %561 }
 0x2f4   :  { %v309_v32 = vsel %vm293_vm3, %v562_v31, 0.0 }
 0x2f5   :  { %310 = vadd.xlane.f32.xlu1 %v309_v32 }
 0x306   :  { %392 = vrot.lane.b32.xlu1 %v135_v13, %s646_s2 }
 0x37e   :  { %v308_v33 = vpop.xlane.xlu0 %307 }
 0x37f   :  { %563 = vrcp.f32 %v308_v33 }
 0x382   :  { %v311_v34 = vpop.xlane.xlu1 %310 }
 0x383   :  { %565 = vrcp.f32 %v311_v34 }
 0x386   :  { %v393_v35 = vpop.permute.xlu1 %392 }
 0x387   :  { %538 = vmatpush3.msra.mxu1 %v393_v35 }
 0x389   :  { %v564_v36 = vpop.eup %563 }
 0x38a   :  { %v314_v37 = vmul.f32 %v564_v36, %v560_v29 }
 0x38c   :  { %535 = vmatmul.mubr.msk.f32.vlgmr.msra.gmra.mrb[2].mxu0 %vm293_vm3, %v314_v37 }
 0x38d   :  { %v566_v38 = vpop.eup %565 }
 0x38e   :  { %v315_v39 = vmul.f32 %v566_v38, %v562_v31 }
 0x390   :  { %540 = vmatmul.mubr.msk.f32.vlgmr.msra.gmra.mrb[4].mxu1 %vm293_vm3, %v315_v39 }
 0x45f   :  { %v388_v40 = vpop.f32.mrb[2].mxu0 }
 0x460   :  { %468 = vst.msk [vmem:[#allocation7] sm:$0xff] %vm141_vm2, %v388_v40  ;;  %v536_v41 = vpop.f32.mrb[3].mxu0 }
 0x463   :  { %v464_v42 = vpop.f32.mrb[4].mxu1 }
 0x464   :  { %469 = vst.msk [vmem:[#allocation7 + $0x8] sm:$0xff] %vm141_vm2, %v464_v42  ;;  %v541_v43 = vpop.f32.mrb[5].mxu1 }
 0x465   :  { %622 = shalt.err (!%p619_p6)
}
 0x466   :  { %s623_s17 = scalar_lea.hbm %s735_s3, 256 }
 0x467   :  { %p624_p7 = scmp.ne.s32.totalorder %s735_s3, %s623_s17  ;;  %p627_p8 = scmp.lt.u32.totalorder %s623_s17, %s735_s3 }
 0x469   :  { %p629_p9 = pnand %p627_p8, %p624_p7 }
 0x46b   :  { %632 = shalt.err (!%p629_p9)
}
 0x46c   :  { %481 = dma.vmem_to_hbm [thread:$0]  %s476_s13, 256, %s735_s3, [#allocation4], %s640_s22, %s640_s22, %s641_s23  }
 0x46d   :  { %637 = dma.done.wait [#allocation4], 256  }
 0x46e   :  { %638 = vsyncadd [#allocation4], 4294967040 }
 0x46f   :  { %485 = vsyncpa [#allocation3], 1 }
 0x470   :  { %486 = vsyncpa [#allocation6], 1 }
 0x471   :  { %487 = vsyncpa [#allocation4], 1 }

</bundles_post_ra>
